<compile_context>
chip_gen: v6e
topology: v6e:2x2x1
jax: 0.10.0
libtpu: 0.0.40
codegen_flags: <defaults>
</compile_context>

<pallas_src>
import jax
import jax.numpy as jnp
import numpy as np
from jax.experimental import pallas as pl
from jax.experimental.pallas import tpu as pltpu

# ----------------------------- hyper-parameters (small, synthetic) ----------
V = 50          # embed_num
V_MUI = 60      # embed_num_mui
D = 32          # embed_dim
C = 5           # class_num
CI = 2          # two embedding "channels" (static + non-static)
CO = 16         # kernel_num
KS = (3, 4, 5)  # kernel_sizes
N = 2           # batch
L = 8           # sequence length
IN_FEA = len(KS) * CO           # 48
HID = IN_FEA // 2               # 24

KMIN, KMAX = min(KS), max(KS)
LOUT = L - KMIN + 1             # time positions covering every branch's output
assert L >= KMAX, "sequence shorter than largest kernel size"

# ----------------------------- lane/sublane-padded packing constants --------
P = CI * D                      # 64  real channel*embed width
P_TAP = 128                     # lane-padded tap width (cols P..127 are zero)
KP_PAD = KMAX * P_TAP           # 640 fused im2col contraction width
W_PAD = 128                     # lane-padded conv-output / fc1-input width
H_PAD = 128                     # lane-padded fc1-output width
LOUT_PAD = 8                    # sublane-padded time positions per batch
VMAX_PAD = 64                   # sublane-padded vocab rows (real max(V,V_MUI)=60)
ROWS = N * LOUT_PAD             # matmul M dimension (16)


def _align8(x):
    return ((x + 7) // 8) * 8


# One param slab (lane width 128); every segment starts at an 8-row boundary so
# in-kernel static slices never straddle sublane tiles.
TABLE_OFF = 0
WCONV_OFF = TABLE_OFF + VMAX_PAD          # 64
MASK_OFF = WCONV_OFF + KP_PAD             # 704
BCONV_OFF = MASK_OFF + ROWS               # 720
FC1W_OFF = _align8(BCONV_OFF + 1)         # 728
FC1B_OFF = FC1W_OFF + W_PAD               # 856
FC2W_OFF = _align8(FC1B_OFF + 1)          # 864
FC2B_OFF = FC2W_OFF + H_PAD               # 992
SLAB_ROWS = _align8(FC2B_OFF + 1)         # 1000


# ----------------------------- fused Pallas kernel ---------------------------
def fused_cnn_mui_kernel(tok_ref, prm_ref, o_ref, x_ref):
    # tok_ref : SMEM (N, L) int32 token ids
    # prm_ref : VMEM (SLAB_ROWS, 128) f32 packed {table, conv W, mask, bias, fc1, fc2}
    # o_ref   : VMEM (N, C) f32 logits
    # x_ref   : VMEM (ROWS, KP_PAD) f32 scratch -- im2col slab built in-kernel

    # 1) embedding gather + im2col, entirely on-chip (no HBM round trip).
    #    Zero-fill first so padded time rows / padded lanes are finite (never NaN*0).
    x_ref[...] = jnp.zeros_like(x_ref)
    for n in range(N):
        rows = [prm_ref[pl.ds(TABLE_OFF + tok_ref[n, l], 1), :]   # (1, 128) each
                for l in range(L)]
        for t in range(LOUT):
            r = n * LOUT_PAD + t
            for k in range(KMAX):
                # clipped taps only ever meet zero weight rows or masked time t
                pos = min(t + k, L - 1)
                x_ref[r:r + 1, k * P_TAP:(k + 1) * P_TAP] = rows[pos]

    # 2) all 3 conv branches and all taps as ONE 2-D MXU matmul (M=16, K=640, N=128).
    y = jnp.dot(x_ref[...], prm_ref[WCONV_OFF:WCONV_OFF + KP_PAD, :],
                preferred_element_type=jnp.float32)               # (ROWS, 128)
    y = y + prm_ref[MASK_OFF:MASK_OFF + ROWS, :]                  # kill invalid t

    # 3) global max-pool over time per batch row; bias + ReLU after the max (exact).
    f = jnp.concatenate(
        [jnp.max(y[n * LOUT_PAD:(n + 1) * LOUT_PAD, :], axis=0, keepdims=True)
         for n in range(N)], axis=0)                              # (N, 128)
    f = jnp.maximum(f + prm_ref[BCONV_OFF:BCONV_OFF + 1, :], 0.0)

    # 4) fc1 -> ReLU -> fc2; the feature slab never leaves VMEM.
    h = jnp.dot(f, prm_ref[FC1W_OFF:FC1W_OFF + W_PAD, :],
                preferred_element_type=jnp.float32)
    h = jnp.maximum(h + prm_ref[FC1B_OFF:FC1B_OFF + 1, :], 0.0)
    out = jnp.dot(h, prm_ref[FC2W_OFF:FC2W_OFF + H_PAD, :],
                  preferred_element_type=jnp.float32)
    out = out + prm_ref[FC2B_OFF:FC2B_OFF + 1, :]
    o_ref[...] = out[:, :C]


def fused_cnn_mui(tokens, slab):
    flops = 2 * (ROWS * KP_PAD * W_PAD + N * W_PAD * H_PAD + N * H_PAD * W_PAD)
    bytes_accessed = 4 * (slab.size + tokens.size + N * C)
    return pl.pallas_call(
        fused_cnn_mui_kernel,
        out_shape=jax.ShapeDtypeStruct((N, C), jnp.float32),
        in_specs=[pl.BlockSpec(memory_space=pltpu.MemorySpace.SMEM),
                  pl.BlockSpec(memory_space=pltpu.MemorySpace.VMEM)],
        out_specs=pl.BlockSpec(memory_space=pltpu.MemorySpace.VMEM),
        scratch_shapes=[pltpu.VMEM((ROWS, KP_PAD), jnp.float32)],
        cost_estimate=pl.CostEstimate(flops=flops, transcendentals=0,
                                      bytes_accessed=bytes_accessed),
    )(tokens, slab)


# ----------------------------- parameters (torch layout) --------------------
def init_params(key):
    keys = jax.random.split(key, 8 + len(KS))
    params = {
        "embed_no_static": jax.random.normal(keys[0], (V, D), jnp.float32) * 0.1,
        "embed_static": jax.random.normal(keys[1], (V_MUI, D), jnp.float32) * 0.1,
        "conv_w": [],   # torch layout (Co, Ci, K, D)
        "conv_b": [],
        "fc1_w": jax.random.normal(keys[2], (IN_FEA, HID), jnp.float32)
        * (1.0 / np.sqrt(IN_FEA)),
        "fc1_b": jax.random.normal(keys[3], (HID,), jnp.float32) * 0.01,
        "fc2_w": jax.random.normal(keys[4], (HID, C), jnp.float32)
        * (1.0 / np.sqrt(HID)),
        "fc2_b": jax.random.normal(keys[5], (C,), jnp.float32) * 0.01,
    }
    for i, K in enumerate(KS):
        fan = CI * K * D
        gain = np.sqrt(2.0)  # xavier_normal(gain=sqrt(init_weight_value=2))
        std = gain * np.sqrt(2.0 / (fan + CO))
        w = jax.random.normal(keys[6 + i], (CO, CI, K, D), jnp.float32) * std
        params["conv_w"].append(w)
        params["conv_b"].append(jnp.zeros((CO,), jnp.float32))  # init.uniform(b,0,0)
    return params


# ----------------------------- one-time packing into the param slab ----------
def pack_params(params):
    vmax = max(V, V_MUI)
    # packed embedding table: lanes [0:D] = static channel (ch 0), [D:2D] = no-static
    # (matches torch.stack([x_static, x_no_static], 1))
    emb_s = jnp.pad(params["embed_static"], ((0, vmax - V_MUI), (0, 0)))
    emb_ns = jnp.pad(params["embed_no_static"], ((0, vmax - V), (0, 0)))
    table = jnp.concatenate([emb_s, emb_ns], axis=1)            # (vmax, P)

    # fused conv weight: rows = tap-major (k*P_TAP + ci*D + d), cols = branch*CO + c
    blocks = []
    for K, w in zip(KS, params["conv_w"]):
        wk = jnp.transpose(w, (2, 1, 3, 0)).reshape(K, P, CO)   # (K, P, Co)
        wk = jnp.pad(wk, ((0, KMAX - K), (0, P_TAP - P), (0, 0)))
        blocks.append(wk)
    wconv = jnp.concatenate(blocks, axis=2).reshape(KP_PAD, IN_FEA)
    bconv = jnp.concatenate(params["conv_b"])                   # (48,)

    # additive validity mask, pre-tiled over the batch: (N*LOUT_PAD, 128)
    mask = np.zeros((ROWS, W_PAD), np.float32)
    for n in range(N):
        for bi, K in enumerate(KS):
            mask[n * LOUT_PAD + (L - K + 1): n * LOUT_PAD + LOUT_PAD,
                 bi * CO:(bi + 1) * CO] = -1e30                 # invalid t per branch
        mask[n * LOUT_PAD + LOUT: n * LOUT_PAD + LOUT_PAD, :] = -1e30  # padded t rows

    slab = jnp.zeros((SLAB_ROWS, W_PAD), jnp.float32)
    slab = slab.at[TABLE_OFF:TABLE_OFF + vmax, :P].set(table)
    slab = slab.at[WCONV_OFF:WCONV_OFF + KP_PAD, :IN_FEA].set(wconv)
    slab = slab.at[MASK_OFF:MASK_OFF + ROWS, :].set(jnp.asarray(mask))
    slab = slab.at[BCONV_OFF, :IN_FEA].set(bconv)
    slab = slab.at[FC1W_OFF:FC1W_OFF + IN_FEA, :HID].set(params["fc1_w"])
    slab = slab.at[FC1B_OFF, :HID].set(params["fc1_b"])
    slab = slab.at[FC2W_OFF:FC2W_OFF + HID, :C].set(params["fc2_w"])
    slab = slab.at[FC2B_OFF, :C].set(params["fc2_b"])
    return slab


# ----------------------------- model forward (Pallas) -----------------------
@jax.jit
def cnn_mui_forward(slab, tokens):
    # Single fused pallas_call; no XLA-side gather / reshape / stack remains.
    return fused_cnn_mui(tokens, slab)


# ----------------------------- pure-JAX reference (for checking) ------------
def reference_forward(params, tokens):
    emb_ns = params["embed_no_static"][tokens]
    emb_s = params["embed_static"][tokens]
    x = jnp.stack([emb_s, emb_ns], axis=1)  # (N, 2, L, D)  NCHW
    feats = []
    for w, b in zip(params["conv_w"], params["conv_b"]):
        y = jax.lax.conv_general_dilated(
            x, w, window_strides=(1, 1), padding="VALID",
            dimension_numbers=("NCHW", "OIHW", "NCHW"))         # (N, Co, Lout, 1)
        y = jnp.maximum(y + b[None, :, None, None], 0.0)[..., 0]
        feats.append(jnp.max(y, axis=2))
    f = jnp.concatenate(feats, axis=1)
    h = jnp.maximum(f @ params["fc1_w"] + params["fc1_b"], 0.0)
    return h @ params["fc2_w"] + params["fc2_b"]


# ----------------------------- main ------------------------------------------
if __name__ == "__main__":
    key = jax.random.PRNGKey(0)
    pkey, tkey = jax.random.split(key)
    params = init_params(pkey)
    slab = pack_params(params)     # one-time weight/embedding/mask packing
    tokens = jax.random.randint(tkey, (N, L), 0, min(V, V_MUI), dtype=jnp.int32)

    logit = jax.block_until_ready(cnn_mui_forward(slab, tokens))
    ref = jax.block_until_ready(reference_forward(params, tokens))

    assert logit.shape == (N, C), logit.shape
    np.testing.assert_allclose(np.asarray(logit), np.asarray(ref),
                               rtol=1e-3, atol=1e-3)
    print("KERNEL_OK")
</pallas_src>

<mosaic_0001>
module attributes {stable_mosaic.version = 11 : i64} {
  func.func @fused_cnn_mui_kernel(%arg0: memref<2x8xi32, #tpu.memory_space<smem>>, %arg1: memref<1000x128xf32, #tpu.memory_space<vmem>>, %arg2: memref<2x5xf32, #tpu.memory_space<vmem>>, %arg3: memref<16x640xf32, #tpu.memory_space<vmem>>) attributes {dimension_semantics = [], scalar_prefetch = 0 : i64, scratch_operands = 1 : i64, tpu.core_type = #tpu.core_type<tc>} {
    %cst = arith.constant 0.000000e+00 : f32
    %0 = vector.broadcast %cst : f32 to vector<16x640xf32>
    %c0 = arith.constant 0 : index
    %c0_0 = arith.constant 0 : index
    %1 = vector.load %arg3[%c0, %c0_0] : memref<16x640xf32, #tpu.memory_space<vmem>>, vector<16x640xf32>
    tpu.vector_store %arg3[%c0, %c0_0], %0 {strides = array<i32>} : memref<16x640xf32, #tpu.memory_space<vmem>>, vector<16x640xf32>,
    %c0_1 = arith.constant 0 : index
    %c0_2 = arith.constant 0 : index
    %2 = memref.load %arg0[%c0_1, %c0_2] : memref<2x8xi32, #tpu.memory_space<smem>>
    %c0_i32 = arith.constant 0 : i32
    %3 = arith.addi %c0_i32, %2 : i32
    %4 = arith.index_cast %3 : i32 to index
    %c0_3 = arith.constant 0 : index
    %5 = vector.load %arg1[%4, %c0_3] : memref<1000x128xf32, #tpu.memory_space<vmem>>, vector<1x128xf32>
    %c0_4 = arith.constant 0 : index
    %c1 = arith.constant 1 : index
    %6 = memref.load %arg0[%c0_4, %c1] : memref<2x8xi32, #tpu.memory_space<smem>>
    %c0_i32_5 = arith.constant 0 : i32
    %7 = arith.addi %c0_i32_5, %6 : i32
    %8 = arith.index_cast %7 : i32 to index
    %c0_6 = arith.constant 0 : index
    %9 = vector.load %arg1[%8, %c0_6] : memref<1000x128xf32, #tpu.memory_space<vmem>>, vector<1x128xf32>
    %c0_7 = arith.constant 0 : index
    %c2 = arith.constant 2 : index
    %10 = memref.load %arg0[%c0_7, %c2] : memref<2x8xi32, #tpu.memory_space<smem>>
    %c0_i32_8 = arith.constant 0 : i32
    %11 = arith.addi %c0_i32_8, %10 : i32
    %12 = arith.index_cast %11 : i32 to index
    %c0_9 = arith.constant 0 : index
    %13 = vector.load %arg1[%12, %c0_9] : memref<1000x128xf32, #tpu.memory_space<vmem>>, vector<1x128xf32>
    %c0_10 = arith.constant 0 : index
    %c3 = arith.constant 3 : index
    %14 = memref.load %arg0[%c0_10, %c3] : memref<2x8xi32, #tpu.memory_space<smem>>
    %c0_i32_11 = arith.constant 0 : i32
    %15 = arith.addi %c0_i32_11, %14 : i32
    %16 = arith.index_cast %15 : i32 to index
    %c0_12 = arith.constant 0 : index
    %17 = vector.load %arg1[%16, %c0_12] : memref<1000x128xf32, #tpu.memory_space<vmem>>, vector<1x128xf32>
    %c0_13 = arith.constant 0 : index
    %c4 = arith.constant 4 : index
    %18 = memref.load %arg0[%c0_13, %c4] : memref<2x8xi32, #tpu.memory_space<smem>>
    %c0_i32_14 = arith.constant 0 : i32
    %19 = arith.addi %c0_i32_14, %18 : i32
    %20 = arith.index_cast %19 : i32 to index
    %c0_15 = arith.constant 0 : index
    %21 = vector.load %arg1[%20, %c0_15] : memref<1000x128xf32, #tpu.memory_space<vmem>>, vector<1x128xf32>
    %c0_16 = arith.constant 0 : index
    %c5 = arith.constant 5 : index
    %22 = memref.load %arg0[%c0_16, %c5] : memref<2x8xi32, #tpu.memory_space<smem>>
    %c0_i32_17 = arith.constant 0 : i32
    %23 = arith.addi %c0_i32_17, %22 : i32
    %24 = arith.index_cast %23 : i32 to index
    %c0_18 = arith.constant 0 : index
    %25 = vector.load %arg1[%24, %c0_18] : memref<1000x128xf32, #tpu.memory_space<vmem>>, vector<1x128xf32>
    %c0_19 = arith.constant 0 : index
    %c6 = arith.constant 6 : index
    %26 = memref.load %arg0[%c0_19, %c6] : memref<2x8xi32, #tpu.memory_space<smem>>
    %c0_i32_20 = arith.constant 0 : i32
    %27 = arith.addi %c0_i32_20, %26 : i32
    %28 = arith.index_cast %27 : i32 to index
    %c0_21 = arith.constant 0 : index
    %29 = vector.load %arg1[%28, %c0_21] : memref<1000x128xf32, #tpu.memory_space<vmem>>, vector<1x128xf32>
    %c0_22 = arith.constant 0 : index
    %c7 = arith.constant 7 : index
    %30 = memref.load %arg0[%c0_22, %c7] : memref<2x8xi32, #tpu.memory_space<smem>>
    %c0_i32_23 = arith.constant 0 : i32
    %31 = arith.addi %c0_i32_23, %30 : i32
    %32 = arith.index_cast %31 : i32 to index
    %c0_24 = arith.constant 0 : index
    %33 = vector.load %arg1[%32, %c0_24] : memref<1000x128xf32, #tpu.memory_space<vmem>>, vector<1x128xf32>
    %c0_25 = arith.constant 0 : index
    %c0_26 = arith.constant 0 : index
    %34 = vector.load %arg3[%c0_25, %c0_26] : memref<16x640xf32, #tpu.memory_space<vmem>>, vector<1x128xf32>
    tpu.vector_store %arg3[%c0_25, %c0_26], %5 {strides = array<i32>} : memref<16x640xf32, #tpu.memory_space<vmem>>, vector<1x128xf32>,
    %c0_27 = arith.constant 0 : index
    %c128 = arith.constant 128 : index
    %35 = vector.load %arg3[%c0_27, %c128] : memref<16x640xf32, #tpu.memory_space<vmem>>, vector<1x128xf32>
    tpu.vector_store %arg3[%c0_27, %c128], %9 {strides = array<i32>} : memref<16x640xf32, #tpu.memory_space<vmem>>, vector<1x128xf32>,
    %c0_28 = arith.constant 0 : index
    %c256 = arith.constant 256 : index
    %36 = vector.load %arg3[%c0_28, %c256] : memref<16x640xf32, #tpu.memory_space<vmem>>, vector<1x128xf32>
    tpu.vector_store %arg3[%c0_28, %c256], %13 {strides = array<i32>} : memref<16x640xf32, #tpu.memory_space<vmem>>, vector<1x128xf32>,
    %c0_29 = arith.constant 0 : index
    %c384 = arith.constant 384 : index
    %37 = vector.load %arg3[%c0_29, %c384] : memref<16x640xf32, #tpu.memory_space<vmem>>, vector<1x128xf32>
    tpu.vector_store %arg3[%c0_29, %c384], %17 {strides = array<i32>} : memref<16x640xf32, #tpu.memory_space<vmem>>, vector<1x128xf32>,
    %c0_30 = arith.constant 0 : index
    %c512 = arith.constant 512 : index
    %38 = vector.load %arg3[%c0_30, %c512] : memref<16x640xf32, #tpu.memory_space<vmem>>, vector<1x128xf32>
    tpu.vector_store %arg3[%c0_30, %c512], %21 {strides = array<i32>} : memref<16x640xf32, #tpu.memory_space<vmem>>, vector<1x128xf32>,
    %c1_31 = arith.constant 1 : index
    %c0_32 = arith.constant 0 : index
    %39 = vector.load %arg3[%c1_31, %c0_32] : memref<16x640xf32, #tpu.memory_space<vmem>>, vector<1x128xf32>
    tpu.vector_store %arg3[%c1_31, %c0_32], %9 {strides = array<i32>} : memref<16x640xf32, #tpu.memory_space<vmem>>, vector<1x128xf32>,
    %c1_33 = arith.constant 1 : index
    %c128_34 = arith.constant 128 : index
    %40 = vector.load %arg3[%c1_33, %c128_34] : memref<16x640xf32, #tpu.memory_space<vmem>>, vector<1x128xf32>
    tpu.vector_store %arg3[%c1_33, %c128_34], %13 {strides = array<i32>} : memref<16x640xf32, #tpu.memory_space<vmem>>, vector<1x128xf32>,
    %c1_35 = arith.constant 1 : index
    %c256_36 = arith.constant 256 : index
    %41 = vector.load %arg3[%c1_35, %c256_36] : memref<16x640xf32, #tpu.memory_space<vmem>>, vector<1x128xf32>
    tpu.vector_store %arg3[%c1_35, %c256_36], %17 {strides = array<i32>} : memref<16x640xf32, #tpu.memory_space<vmem>>, vector<1x128xf32>,
    %c1_37 = arith.constant 1 : index
    %c384_38 = arith.constant 384 : index
    %42 = vector.load %arg3[%c1_37, %c384_38] : memref<16x640xf32, #tpu.memory_space<vmem>>, vector<1x128xf32>
    tpu.vector_store %arg3[%c1_37, %c384_38], %21 {strides = array<i32>} : memref<16x640xf32, #tpu.memory_space<vmem>>, vector<1x128xf32>,
    %c1_39 = arith.constant 1 : index
    %c512_40 = arith.constant 512 : index
    %43 = vector.load %arg3[%c1_39, %c512_40] : memref<16x640xf32, #tpu.memory_space<vmem>>, vector<1x128xf32>
    tpu.vector_store %arg3[%c1_39, %c512_40], %25 {strides = array<i32>} : memref<16x640xf32, #tpu.memory_space<vmem>>, vector<1x128xf32>,
    %c2_41 = arith.constant 2 : index
    %c0_42 = arith.constant 0 : index
    %44 = vector.load %arg3[%c2_41, %c0_42] : memref<16x640xf32, #tpu.memory_space<vmem>>, vector<1x128xf32>
    tpu.vector_store %arg3[%c2_41, %c0_42], %13 {strides = array<i32>} : memref<16x640xf32, #tpu.memory_space<vmem>>, vector<1x128xf32>,
    %c2_43 = arith.constant 2 : index
    %c128_44 = arith.constant 128 : index
    %45 = vector.load %arg3[%c2_43, %c128_44] : memref<16x640xf32, #tpu.memory_space<vmem>>, vector<1x128xf32>
    tpu.vector_store %arg3[%c2_43, %c128_44], %17 {strides = array<i32>} : memref<16x640xf32, #tpu.memory_space<vmem>>, vector<1x128xf32>,
    %c2_45 = arith.constant 2 : index
    %c256_46 = arith.constant 256 : index
    %46 = vector.load %arg3[%c2_45, %c256_46] : memref<16x640xf32, #tpu.memory_space<vmem>>, vector<1x128xf32>
    tpu.vector_store %arg3[%c2_45, %c256_46], %21 {strides = array<i32>} : memref<16x640xf32, #tpu.memory_space<vmem>>, vector<1x128xf32>,
    %c2_47 = arith.constant 2 : index
    %c384_48 = arith.constant 384 : index
    %47 = vector.load %arg3[%c2_47, %c384_48] : memref<16x640xf32, #tpu.memory_space<vmem>>, vector<1x128xf32>
    tpu.vector_store %arg3[%c2_47, %c384_48], %25 {strides = array<i32>} : memref<16x640xf32, #tpu.memory_space<vmem>>, vector<1x128xf32>,
    %c2_49 = arith.constant 2 : index
    %c512_50 = arith.constant 512 : index
    %48 = vector.load %arg3[%c2_49, %c512_50] : memref<16x640xf32, #tpu.memory_space<vmem>>, vector<1x128xf32>
    tpu.vector_store %arg3[%c2_49, %c512_50], %29 {strides = array<i32>} : memref<16x640xf32, #tpu.memory_space<vmem>>, vector<1x128xf32>,
    %c3_51 = arith.constant 3 : index
    %c0_52 = arith.constant 0 : index
    %49 = vector.load %arg3[%c3_51, %c0_52] : memref<16x640xf32, #tpu.memory_space<vmem>>, vector<1x128xf32>
    tpu.vector_store %arg3[%c3_51, %c0_52], %17 {strides = array<i32>} : memref<16x640xf32, #tpu.memory_space<vmem>>, vector<1x128xf32>,
    %c3_53 = arith.constant 3 : index
    %c128_54 = arith.constant 128 : index
    %50 = vector.load %arg3[%c3_53, %c128_54] : memref<16x640xf32, #tpu.memory_space<vmem>>, vector<1x128xf32>
    tpu.vector_store %arg3[%c3_53, %c128_54], %21 {strides = array<i32>} : memref<16x640xf32, #tpu.memory_space<vmem>>, vector<1x128xf32>,
    %c3_55 = arith.constant 3 : index
    %c256_56 = arith.constant 256 : index
    %51 = vector.load %arg3[%c3_55, %c256_56] : memref<16x640xf32, #tpu.memory_space<vmem>>, vector<1x128xf32>
    tpu.vector_store %arg3[%c3_55, %c256_56], %25 {strides = array<i32>} : memref<16x640xf32, #tpu.memory_space<vmem>>, vector<1x128xf32>,
    %c3_57 = arith.constant 3 : index
    %c384_58 = arith.constant 384 : index
    %52 = vector.load %arg3[%c3_57, %c384_58] : memref<16x640xf32, #tpu.memory_space<vmem>>, vector<1x128xf32>
    tpu.vector_store %arg3[%c3_57, %c384_58], %29 {strides = array<i32>} : memref<16x640xf32, #tpu.memory_space<vmem>>, vector<1x128xf32>,
    %c3_59 = arith.constant 3 : index
    %c512_60 = arith.constant 512 : index
    %53 = vector.load %arg3[%c3_59, %c512_60] : memref<16x640xf32, #tpu.memory_space<vmem>>, vector<1x128xf32>
    tpu.vector_store %arg3[%c3_59, %c512_60], %33 {strides = array<i32>} : memref<16x640xf32, #tpu.memory_space<vmem>>, vector<1x128xf32>,
    %c4_61 = arith.constant 4 : index
    %c0_62 = arith.constant 0 : index
    %54 = vector.load %arg3[%c4_61, %c0_62] : memref<16x640xf32, #tpu.memory_space<vmem>>, vector<1x128xf32>
    tpu.vector_store %arg3[%c4_61, %c0_62], %21 {strides = array<i32>} : memref<16x640xf32, #tpu.memory_space<vmem>>, vector<1x128xf32>,
    %c4_63 = arith.constant 4 : index
    %c128_64 = arith.constant 128 : index
    %55 = vector.load %arg3[%c4_63, %c128_64] : memref<16x640xf32, #tpu.memory_space<vmem>>, vector<1x128xf32>
    tpu.vector_store %arg3[%c4_63, %c128_64], %25 {strides = array<i32>} : memref<16x640xf32, #tpu.memory_space<vmem>>, vector<1x128xf32>,
    %c4_65 = arith.constant 4 : index
    %c256_66 = arith.constant 256 : index
    %56 = vector.load %arg3[%c4_65, %c256_66] : memref<16x640xf32, #tpu.memory_space<vmem>>, vector<1x128xf32>
    tpu.vector_store %arg3[%c4_65, %c256_66], %29 {strides = array<i32>} : memref<16x640xf32, #tpu.memory_space<vmem>>, vector<1x128xf32>,
    %c4_67 = arith.constant 4 : index
    %c384_68 = arith.constant 384 : index
    %57 = vector.load %arg3[%c4_67, %c384_68] : memref<16x640xf32, #tpu.memory_space<vmem>>, vector<1x128xf32>
    tpu.vector_store %arg3[%c4_67, %c384_68], %33 {strides = array<i32>} : memref<16x640xf32, #tpu.memory_space<vmem>>, vector<1x128xf32>,
    %c4_69 = arith.constant 4 : index
    %c512_70 = arith.constant 512 : index
    %58 = vector.load %arg3[%c4_69, %c512_70] : memref<16x640xf32, #tpu.memory_space<vmem>>, vector<1x128xf32>
    tpu.vector_store %arg3[%c4_69, %c512_70], %33 {strides = array<i32>} : memref<16x640xf32, #tpu.memory_space<vmem>>, vector<1x128xf32>,
    %c5_71 = arith.constant 5 : index
    %c0_72 = arith.constant 0 : index
    %59 = vector.load %arg3[%c5_71, %c0_72] : memref<16x640xf32, #tpu.memory_space<vmem>>, vector<1x128xf32>
    tpu.vector_store %arg3[%c5_71, %c0_72], %25 {strides = array<i32>} : memref<16x640xf32, #tpu.memory_space<vmem>>, vector<1x128xf32>,
    %c5_73 = arith.constant 5 : index
    %c128_74 = arith.constant 128 : index
    %60 = vector.load %arg3[%c5_73, %c128_74] : memref<16x640xf32, #tpu.memory_space<vmem>>, vector<1x128xf32>
    tpu.vector_store %arg3[%c5_73, %c128_74], %29 {strides = array<i32>} : memref<16x640xf32, #tpu.memory_space<vmem>>, vector<1x128xf32>,
    %c5_75 = arith.constant 5 : index
    %c256_76 = arith.constant 256 : index
    %61 = vector.load %arg3[%c5_75, %c256_76] : memref<16x640xf32, #tpu.memory_space<vmem>>, vector<1x128xf32>
    tpu.vector_store %arg3[%c5_75, %c256_76], %33 {strides = array<i32>} : memref<16x640xf32, #tpu.memory_space<vmem>>, vector<1x128xf32>,
    %c5_77 = arith.constant 5 : index
    %c384_78 = arith.constant 384 : index
    %62 = vector.load %arg3[%c5_77, %c384_78] : memref<16x640xf32, #tpu.memory_space<vmem>>, vector<1x128xf32>
    tpu.vector_store %arg3[%c5_77, %c384_78], %33 {strides = array<i32>} : memref<16x640xf32, #tpu.memory_space<vmem>>, vector<1x128xf32>,
    %c5_79 = arith.constant 5 : index
    %c512_80 = arith.constant 512 : index
    %63 = vector.load %arg3[%c5_79, %c512_80] : memref<16x640xf32, #tpu.memory_space<vmem>>, vector<1x128xf32>
    tpu.vector_store %arg3[%c5_79, %c512_80], %33 {strides = array<i32>} : memref<16x640xf32, #tpu.memory_space<vmem>>, vector<1x128xf32>,
    %c1_81 = arith.constant 1 : index
    %c0_82 = arith.constant 0 : index
    %64 = memref.load %arg0[%c1_81, %c0_82] : memref<2x8xi32, #tpu.memory_space<smem>>
    %c0_i32_83 = arith.constant 0 : i32
    %65 = arith.addi %c0_i32_83, %64 : i32
    %66 = arith.index_cast %65 : i32 to index
    %c0_84 = arith.constant 0 : index
    %67 = vector.load %arg1[%66, %c0_84] : memref<1000x128xf32, #tpu.memory_space<vmem>>, vector<1x128xf32>
    %c1_85 = arith.constant 1 : index
    %c1_86 = arith.constant 1 : index
    %68 = memref.load %arg0[%c1_85, %c1_86] : memref<2x8xi32, #tpu.memory_space<smem>>
    %c0_i32_87 = arith.constant 0 : i32
    %69 = arith.addi %c0_i32_87, %68 : i32
    %70 = arith.index_cast %69 : i32 to index
    %c0_88 = arith.constant 0 : index
    %71 = vector.load %arg1[%70, %c0_88] : memref<1000x128xf32, #tpu.memory_space<vmem>>, vector<1x128xf32>
    %c1_89 = arith.constant 1 : index
    %c2_90 = arith.constant 2 : index
    %72 = memref.load %arg0[%c1_89, %c2_90] : memref<2x8xi32, #tpu.memory_space<smem>>
    %c0_i32_91 = arith.constant 0 : i32
    %73 = arith.addi %c0_i32_91, %72 : i32
    %74 = arith.index_cast %73 : i32 to index
    %c0_92 = arith.constant 0 : index
    %75 = vector.load %arg1[%74, %c0_92] : memref<1000x128xf32, #tpu.memory_space<vmem>>, vector<1x128xf32>
    %c1_93 = arith.constant 1 : index
    %c3_94 = arith.constant 3 : index
    %76 = memref.load %arg0[%c1_93, %c3_94] : memref<2x8xi32, #tpu.memory_space<smem>>
    %c0_i32_95 = arith.constant 0 : i32
    %77 = arith.addi %c0_i32_95, %76 : i32
    %78 = arith.index_cast %77 : i32 to index
    %c0_96 = arith.constant 0 : index
    %79 = vector.load %arg1[%78, %c0_96] : memref<1000x128xf32, #tpu.memory_space<vmem>>, vector<1x128xf32>
    %c1_97 = arith.constant 1 : index
    %c4_98 = arith.constant 4 : index
    %80 = memref.load %arg0[%c1_97, %c4_98] : memref<2x8xi32, #tpu.memory_space<smem>>
    %c0_i32_99 = arith.constant 0 : i32
    %81 = arith.addi %c0_i32_99, %80 : i32
    %82 = arith.index_cast %81 : i32 to index
    %c0_100 = arith.constant 0 : index
    %83 = vector.load %arg1[%82, %c0_100] : memref<1000x128xf32, #tpu.memory_space<vmem>>, vector<1x128xf32>
    %c1_101 = arith.constant 1 : index
    %c5_102 = arith.constant 5 : index
    %84 = memref.load %arg0[%c1_101, %c5_102] : memref<2x8xi32, #tpu.memory_space<smem>>
    %c0_i32_103 = arith.constant 0 : i32
    %85 = arith.addi %c0_i32_103, %84 : i32
    %86 = arith.index_cast %85 : i32 to index
    %c0_104 = arith.constant 0 : index
    %87 = vector.load %arg1[%86, %c0_104] : memref<1000x128xf32, #tpu.memory_space<vmem>>, vector<1x128xf32>
    %c1_105 = arith.constant 1 : index
    %c6_106 = arith.constant 6 : index
    %88 = memref.load %arg0[%c1_105, %c6_106] : memref<2x8xi32, #tpu.memory_space<smem>>
    %c0_i32_107 = arith.constant 0 : i32
    %89 = arith.addi %c0_i32_107, %88 : i32
    %90 = arith.index_cast %89 : i32 to index
    %c0_108 = arith.constant 0 : index
    %91 = vector.load %arg1[%90, %c0_108] : memref<1000x128xf32, #tpu.memory_space<vmem>>, vector<1x128xf32>
    %c1_109 = arith.constant 1 : index
    %c7_110 = arith.constant 7 : index
    %92 = memref.load %arg0[%c1_109, %c7_110] : memref<2x8xi32, #tpu.memory_space<smem>>
    %c0_i32_111 = arith.constant 0 : i32
    %93 = arith.addi %c0_i32_111, %92 : i32
    %94 = arith.index_cast %93 : i32 to index
    %c0_112 = arith.constant 0 : index
    %95 = vector.load %arg1[%94, %c0_112] : memref<1000x128xf32, #tpu.memory_space<vmem>>, vector<1x128xf32>
    %c8 = arith.constant 8 : index
    %c0_113 = arith.constant 0 : index
    %96 = vector.load %arg3[%c8, %c0_113] : memref<16x640xf32, #tpu.memory_space<vmem>>, vector<1x128xf32>
    tpu.vector_store %arg3[%c8, %c0_113], %67 {strides = array<i32>} : memref<16x640xf32, #tpu.memory_space<vmem>>, vector<1x128xf32>,
    %c8_114 = arith.constant 8 : index
    %c128_115 = arith.constant 128 : index
    %97 = vector.load %arg3[%c8_114, %c128_115] : memref<16x640xf32, #tpu.memory_space<vmem>>, vector<1x128xf32>
    tpu.vector_store %arg3[%c8_114, %c128_115], %71 {strides = array<i32>} : memref<16x640xf32, #tpu.memory_space<vmem>>, vector<1x128xf32>,
    %c8_116 = arith.constant 8 : index
    %c256_117 = arith.constant 256 : index
    %98 = vector.load %arg3[%c8_116, %c256_117] : memref<16x640xf32, #tpu.memory_space<vmem>>, vector<1x128xf32>
    tpu.vector_store %arg3[%c8_116, %c256_117], %75 {strides = array<i32>} : memref<16x640xf32, #tpu.memory_space<vmem>>, vector<1x128xf32>,
    %c8_118 = arith.constant 8 : index
    %c384_119 = arith.constant 384 : index
    %99 = vector.load %arg3[%c8_118, %c384_119] : memref<16x640xf32, #tpu.memory_space<vmem>>, vector<1x128xf32>
    tpu.vector_store %arg3[%c8_118, %c384_119], %79 {strides = array<i32>} : memref<16x640xf32, #tpu.memory_space<vmem>>, vector<1x128xf32>,
    %c8_120 = arith.constant 8 : index
    %c512_121 = arith.constant 512 : index
    %100 = vector.load %arg3[%c8_120, %c512_121] : memref<16x640xf32, #tpu.memory_space<vmem>>, vector<1x128xf32>
    tpu.vector_store %arg3[%c8_120, %c512_121], %83 {strides = array<i32>} : memref<16x640xf32, #tpu.memory_space<vmem>>, vector<1x128xf32>,
    %c9 = arith.constant 9 : index
    %c0_122 = arith.constant 0 : index
    %101 = vector.load %arg3[%c9, %c0_122] : memref<16x640xf32, #tpu.memory_space<vmem>>, vector<1x128xf32>
    tpu.vector_store %arg3[%c9, %c0_122], %71 {strides = array<i32>} : memref<16x640xf32, #tpu.memory_space<vmem>>, vector<1x128xf32>,
    %c9_123 = arith.constant 9 : index
    %c128_124 = arith.constant 128 : index
    %102 = vector.load %arg3[%c9_123, %c128_124] : memref<16x640xf32, #tpu.memory_space<vmem>>, vector<1x128xf32>
    tpu.vector_store %arg3[%c9_123, %c128_124], %75 {strides = array<i32>} : memref<16x640xf32, #tpu.memory_space<vmem>>, vector<1x128xf32>,
    %c9_125 = arith.constant 9 : index
    %c256_126 = arith.constant 256 : index
    %103 = vector.load %arg3[%c9_125, %c256_126] : memref<16x640xf32, #tpu.memory_space<vmem>>, vector<1x128xf32>
    tpu.vector_store %arg3[%c9_125, %c256_126], %79 {strides = array<i32>} : memref<16x640xf32, #tpu.memory_space<vmem>>, vector<1x128xf32>,
    %c9_127 = arith.constant 9 : index
    %c384_128 = arith.constant 384 : index
    %104 = vector.load %arg3[%c9_127, %c384_128] : memref<16x640xf32, #tpu.memory_space<vmem>>, vector<1x128xf32>
    tpu.vector_store %arg3[%c9_127, %c384_128], %83 {strides = array<i32>} : memref<16x640xf32, #tpu.memory_space<vmem>>, vector<1x128xf32>,
    %c9_129 = arith.constant 9 : index
    %c512_130 = arith.constant 512 : index
    %105 = vector.load %arg3[%c9_129, %c512_130] : memref<16x640xf32, #tpu.memory_space<vmem>>, vector<1x128xf32>
    tpu.vector_store %arg3[%c9_129, %c512_130], %87 {strides = array<i32>} : memref<16x640xf32, #tpu.memory_space<vmem>>, vector<1x128xf32>,
    %c10 = arith.constant 10 : index
    %c0_131 = arith.constant 0 : index
    %106 = vector.load %arg3[%c10, %c0_131] : memref<16x640xf32, #tpu.memory_space<vmem>>, vector<1x128xf32>
    tpu.vector_store %arg3[%c10, %c0_131], %75 {strides = array<i32>} : memref<16x640xf32, #tpu.memory_space<vmem>>, vector<1x128xf32>,
    %c10_132 = arith.constant 10 : index
    %c128_133 = arith.constant 128 : index
    %107 = vector.load %arg3[%c10_132, %c128_133] : memref<16x640xf32, #tpu.memory_space<vmem>>, vector<1x128xf32>
    tpu.vector_store %arg3[%c10_132, %c128_133], %79 {strides = array<i32>} : memref<16x640xf32, #tpu.memory_space<vmem>>, vector<1x128xf32>,
    %c10_134 = arith.constant 10 : index
    %c256_135 = arith.constant 256 : index
    %108 = vector.load %arg3[%c10_134, %c256_135] : memref<16x640xf32, #tpu.memory_space<vmem>>, vector<1x128xf32>
    tpu.vector_store %arg3[%c10_134, %c256_135], %83 {strides = array<i32>} : memref<16x640xf32, #tpu.memory_space<vmem>>, vector<1x128xf32>,
    %c10_136 = arith.constant 10 : index
    %c384_137 = arith.constant 384 : index
    %109 = vector.load %arg3[%c10_136, %c384_137] : memref<16x640xf32, #tpu.memory_space<vmem>>, vector<1x128xf32>
    tpu.vector_store %arg3[%c10_136, %c384_137], %87 {strides = array<i32>} : memref<16x640xf32, #tpu.memory_space<vmem>>, vector<1x128xf32>,
    %c10_138 = arith.constant 10 : index
    %c512_139 = arith.constant 512 : index
    %110 = vector.load %arg3[%c10_138, %c512_139] : memref<16x640xf32, #tpu.memory_space<vmem>>, vector<1x128xf32>
    tpu.vector_store %arg3[%c10_138, %c512_139], %91 {strides = array<i32>} : memref<16x640xf32, #tpu.memory_space<vmem>>, vector<1x128xf32>,
    %c11 = arith.constant 11 : index
    %c0_140 = arith.constant 0 : index
    %111 = vector.load %arg3[%c11, %c0_140] : memref<16x640xf32, #tpu.memory_space<vmem>>, vector<1x128xf32>
    tpu.vector_store %arg3[%c11, %c0_140], %79 {strides = array<i32>} : memref<16x640xf32, #tpu.memory_space<vmem>>, vector<1x128xf32>,
    %c11_141 = arith.constant 11 : index
    %c128_142 = arith.constant 128 : index
    %112 = vector.load %arg3[%c11_141, %c128_142] : memref<16x640xf32, #tpu.memory_space<vmem>>, vector<1x128xf32>
    tpu.vector_store %arg3[%c11_141, %c128_142], %83 {strides = array<i32>} : memref<16x640xf32, #tpu.memory_space<vmem>>, vector<1x128xf32>,
    %c11_143 = arith.constant 11 : index
    %c256_144 = arith.constant 256 : index
    %113 = vector.load %arg3[%c11_143, %c256_144] : memref<16x640xf32, #tpu.memory_space<vmem>>, vector<1x128xf32>
    tpu.vector_store %arg3[%c11_143, %c256_144], %87 {strides = array<i32>} : memref<16x640xf32, #tpu.memory_space<vmem>>, vector<1x128xf32>,
    %c11_145 = arith.constant 11 : index
    %c384_146 = arith.constant 384 : index
    %114 = vector.load %arg3[%c11_145, %c384_146] : memref<16x640xf32, #tpu.memory_space<vmem>>, vector<1x128xf32>
    tpu.vector_store %arg3[%c11_145, %c384_146], %91 {strides = array<i32>} : memref<16x640xf32, #tpu.memory_space<vmem>>, vector<1x128xf32>,
    %c11_147 = arith.constant 11 : index
    %c512_148 = arith.constant 512 : index
    %115 = vector.load %arg3[%c11_147, %c512_148] : memref<16x640xf32, #tpu.memory_space<vmem>>, vector<1x128xf32>
    tpu.vector_store %arg3[%c11_147, %c512_148], %95 {strides = array<i32>} : memref<16x640xf32, #tpu.memory_space<vmem>>, vector<1x128xf32>,
    %c12 = arith.constant 12 : index
    %c0_149 = arith.constant 0 : index
    %116 = vector.load %arg3[%c12, %c0_149] : memref<16x640xf32, #tpu.memory_space<vmem>>, vector<1x128xf32>
    tpu.vector_store %arg3[%c12, %c0_149], %83 {strides = array<i32>} : memref<16x640xf32, #tpu.memory_space<vmem>>, vector<1x128xf32>,
    %c12_150 = arith.constant 12 : index
    %c128_151 = arith.constant 128 : index
    %117 = vector.load %arg3[%c12_150, %c128_151] : memref<16x640xf32, #tpu.memory_space<vmem>>, vector<1x128xf32>
    tpu.vector_store %arg3[%c12_150, %c128_151], %87 {strides = array<i32>} : memref<16x640xf32, #tpu.memory_space<vmem>>, vector<1x128xf32>,
    %c12_152 = arith.constant 12 : index
    %c256_153 = arith.constant 256 : index
    %118 = vector.load %arg3[%c12_152, %c256_153] : memref<16x640xf32, #tpu.memory_space<vmem>>, vector<1x128xf32>
    tpu.vector_store %arg3[%c12_152, %c256_153], %91 {strides = array<i32>} : memref<16x640xf32, #tpu.memory_space<vmem>>, vector<1x128xf32>,
    %c12_154 = arith.constant 12 : index
    %c384_155 = arith.constant 384 : index
    %119 = vector.load %arg3[%c12_154, %c384_155] : memref<16x640xf32, #tpu.memory_space<vmem>>, vector<1x128xf32>
    tpu.vector_store %arg3[%c12_154, %c384_155], %95 {strides = array<i32>} : memref<16x640xf32, #tpu.memory_space<vmem>>, vector<1x128xf32>,
    %c12_156 = arith.constant 12 : index
    %c512_157 = arith.constant 512 : index
    %120 = vector.load %arg3[%c12_156, %c512_157] : memref<16x640xf32, #tpu.memory_space<vmem>>, vector<1x128xf32>
    tpu.vector_store %arg3[%c12_156, %c512_157], %95 {strides = array<i32>} : memref<16x640xf32, #tpu.memory_space<vmem>>, vector<1x128xf32>,
    %c13 = arith.constant 13 : index
    %c0_158 = arith.constant 0 : index
    %121 = vector.load %arg3[%c13, %c0_158] : memref<16x640xf32, #tpu.memory_space<vmem>>, vector<1x128xf32>
    tpu.vector_store %arg3[%c13, %c0_158], %87 {strides = array<i32>} : memref<16x640xf32, #tpu.memory_space<vmem>>, vector<1x128xf32>,
    %c13_159 = arith.constant 13 : index
    %c128_160 = arith.constant 128 : index
    %122 = vector.load %arg3[%c13_159, %c128_160] : memref<16x640xf32, #tpu.memory_space<vmem>>, vector<1x128xf32>
    tpu.vector_store %arg3[%c13_159, %c128_160], %91 {strides = array<i32>} : memref<16x640xf32, #tpu.memory_space<vmem>>, vector<1x128xf32>,
    %c13_161 = arith.constant 13 : index
    %c256_162 = arith.constant 256 : index
    %123 = vector.load %arg3[%c13_161, %c256_162] : memref<16x640xf32, #tpu.memory_space<vmem>>, vector<1x128xf32>
    tpu.vector_store %arg3[%c13_161, %c256_162], %95 {strides = array<i32>} : memref<16x640xf32, #tpu.memory_space<vmem>>, vector<1x128xf32>,
    %c13_163 = arith.constant 13 : index
    %c384_164 = arith.constant 384 : index
    %124 = vector.load %arg3[%c13_163, %c384_164] : memref<16x640xf32, #tpu.memory_space<vmem>>, vector<1x128xf32>
    tpu.vector_store %arg3[%c13_163, %c384_164], %95 {strides = array<i32>} : memref<16x640xf32, #tpu.memory_space<vmem>>, vector<1x128xf32>,
    %c13_165 = arith.constant 13 : index
    %c512_166 = arith.constant 512 : index
    %125 = vector.load %arg3[%c13_165, %c512_166] : memref<16x640xf32, #tpu.memory_space<vmem>>, vector<1x128xf32>
    tpu.vector_store %arg3[%c13_165, %c512_166], %95 {strides = array<i32>} : memref<16x640xf32, #tpu.memory_space<vmem>>, vector<1x128xf32>,
    %c0_167 = arith.constant 0 : index
    %c0_168 = arith.constant 0 : index
    %126 = vector.load %arg3[%c0_167, %c0_168] : memref<16x640xf32, #tpu.memory_space<vmem>>, vector<16x640xf32>
    %c64 = arith.constant 64 : index
    %c0_169 = arith.constant 0 : index
    %127 = vector.load %arg1[%c64, %c0_169] : memref<1000x128xf32, #tpu.memory_space<vmem>>, vector<640x128xf32>
    %cst_170 = arith.constant dense<0.000000e+00> : vector<16x128xf32>
    %128 = tpu.matmul %126, %127, %cst_170 {dimension_numbers = #tpu.dot_dimension_numbers<[1], [0], [0], [1], [0, 0, 1, 1], [], []>} : vector<16x640xf32>, vector<640x128xf32>, vector<16x128xf32> -> vector<16x128xf32>
    %c704 = arith.constant 704 : index
    %c0_171 = arith.constant 0 : index
    %129 = vector.load %arg1[%c704, %c0_171] : memref<1000x128xf32, #tpu.memory_space<vmem>>, vector<16x128xf32>
    %130 = arith.addf %128, %129 : vector<16x128xf32>
    %131 = vector.extract_strided_slice %130 {offsets = [0, 0], sizes = [8, 128], strides = [1, 1]} : vector<16x128xf32> to vector<8x128xf32>
    %cst_172 = arith.constant dense<0xFF800000> : vector<128xf32>
    %132 = vector.multi_reduction <maximumf>, %131, %cst_172 [0] : vector<8x128xf32> to vector<128xf32>
    %133 = vector.shape_cast %132 : vector<128xf32> to vector<1x128xf32>
    %134 = vector.extract_strided_slice %130 {offsets = [8, 0], sizes = [8, 128], strides = [1, 1]} : vector<16x128xf32> to vector<8x128xf32>
    %cst_173 = arith.constant dense<0xFF800000> : vector<128xf32>
    %135 = vector.multi_reduction <maximumf>, %134, %cst_173 [0] : vector<8x128xf32> to vector<128xf32>
    %136 = vector.shape_cast %135 : vector<128xf32> to vector<1x128xf32>
    %137 = tpu.concatenate %133, %136 in 0 : vector<1x128xf32>, vector<1x128xf32> -> vector<2x128xf32>
    %c720 = arith.constant 720 : index
    %c0_174 = arith.constant 0 : index
    %138 = vector.load %arg1[%c720, %c0_174] : memref<1000x128xf32, #tpu.memory_space<vmem>>, vector<1x128xf32>
    %139 = vector.broadcast %138 : vector<1x128xf32> to vector<2x128xf32>
    %140 = arith.addf %137, %139 : vector<2x128xf32>
    %cst_175 = arith.constant 0.000000e+00 : f32
    %141 = vector.broadcast %cst_175 : f32 to vector<2x128xf32>
    %142 = arith.maximumf %140, %141 : vector<2x128xf32>
    %c728 = arith.constant 728 : index
    %c0_176 = arith.constant 0 : index
    %143 = vector.load %arg1[%c728, %c0_176] : memref<1000x128xf32, #tpu.memory_space<vmem>>, vector<128x128xf32>
    %cst_177 = arith.constant dense<0.000000e+00> : vector<2x128xf32>
    %144 = tpu.matmul %142, %143, %cst_177 {dimension_numbers = #tpu.dot_dimension_numbers<[1], [0], [0], [1], [0, 0, 1, 1], [], []>} : vector<2x128xf32>, vector<128x128xf32>, vector<2x128xf32> -> vector<2x128xf32>
    %c856 = arith.constant 856 : index
    %c0_178 = arith.constant 0 : index
    %145 = vector.load %arg1[%c856, %c0_178] : memref<1000x128xf32, #tpu.memory_space<vmem>>, vector<1x128xf32>
    %146 = vector.broadcast %145 : vector<1x128xf32> to vector<2x128xf32>
    %147 = arith.addf %144, %146 : vector<2x128xf32>
    %cst_179 = arith.constant 0.000000e+00 : f32
    %148 = vector.broadcast %cst_179 : f32 to vector<2x128xf32>
    %149 = arith.maximumf %147, %148 : vector<2x128xf32>
    %c864 = arith.constant 864 : index
    %c0_180 = arith.constant 0 : index
    %150 = vector.load %arg1[%c864, %c0_180] : memref<1000x128xf32, #tpu.memory_space<vmem>>, vector<128x128xf32>
    %cst_181 = arith.constant dense<0.000000e+00> : vector<2x128xf32>
    %151 = tpu.matmul %149, %150, %cst_181 {dimension_numbers = #tpu.dot_dimension_numbers<[1], [0], [0], [1], [0, 0, 1, 1], [], []>} : vector<2x128xf32>, vector<128x128xf32>, vector<2x128xf32> -> vector<2x128xf32>
    %c992 = arith.constant 992 : index
    %c0_182 = arith.constant 0 : index
    %152 = vector.load %arg1[%c992, %c0_182] : memref<1000x128xf32, #tpu.memory_space<vmem>>, vector<1x128xf32>
    %153 = vector.broadcast %152 : vector<1x128xf32> to vector<2x128xf32>
    %154 = arith.addf %151, %153 : vector<2x128xf32>
    %155 = vector.extract_strided_slice %154 {offsets = [0, 0], sizes = [2, 5], strides = [1, 1]} : vector<2x128xf32> to vector<2x5xf32>
    %c0_183 = arith.constant 0 : index
    %c0_184 = arith.constant 0 : index
    %156 = vector.load %arg2[%c0_183, %c0_184] : memref<2x5xf32, #tpu.memory_space<vmem>>, vector<2x5xf32>
    tpu.vector_store %arg2[%c0_183, %c0_184], %155 {strides = array<i32>} : memref<2x5xf32, #tpu.memory_space<vmem>>, vector<2x5xf32>,
    return
  }
}

</mosaic_0001>

<bundles_post_ra>
// kernel: cnn_mui_forward.1
= control target key start
LH: loop header
LB: loop body
LE: loop exit
PB: predicated region body
PF: predicated region fallthrough
CT: control target
= control target key end

     0   :  { %7 = vsyncpa [#allocation6], 0  ;;  %s1145_s0 = inlined_call_operand.hbm [shape: s32[2,8], index: 0, kind: input, shape index: {}]   ;;  %s1146_s1 = inlined_call_operand.hbm [shape: f32[1000,128], index: 1, kind: input, shape index: {}]   ;;  %s1147_s2 = inlined_call_operand.hbm [shape: f32[2,5], index: 2, kind: output, shape index: {}]  }
   0x1   :  { %8 = vsyncpa [#allocation4], 0 }
   0x2   :  { %9 = vsyncpa [#allocation5], 0  ;;  %s1022_s9 = smov [#allocation3]   ;;  %s1023_s12 = smov [#allocation7]  }
   0x3   :  { %17 = dma.hbm_to_smem %s1145_s0, 32, %s1022_s9, [#allocation6]  }
   0x4   :  { %s23_s13 = sshll.u32 %s1023_s12, 4  ;;  %s24_s13 = int_to_ptr.vmem [resolvable:$true] %s23_s13 }
   0x5   :  { %s984_s14 = scalar_lea.vmem %s24_s13, 16000  ;;  %p989_p1 = scmp.lt.s32.totalorder %s24_s13, %s24_s13 }
   0x6   :  { %p985_p0 = scmp.ne.s32.totalorder %s24_s13, %s984_s14  ;;  %p990_p2 = scmp.lt.s32.totalorder %s984_s14, %s984_s14 }
   0x8   :  { %p991_p3 = por %p990_p2, %p989_p1 }
   0xa   :  { %p992_p4 = pnand %p991_p3, %p985_p0 }
   0xc   :  { %995 = shalt.err (!%p992_p4)
}
   0xd   :  { %s1024_s15 = smov 128   ;;  %s1025_s16 = smov 8  }
   0xe   :  { %29 = dma.hbm_to_vmem [thread:$0]  %s1146_s1, 16000, %s24_s13, [#allocation4], %s1024_s15, %s1024_s15, %s1025_s16  }
   0xf   :  { %1016 = dma.done.wait [#allocation6], 32  }
  0x10   :  { %1017 = vsyncadd [#allocation6], 4294967264 }
  0x11   :  { %1018 = dma.done.wait [#allocation4], 16000  }
  0x12   :  { %1019 = vsyncadd [#allocation4], 4294951296 }
  0x13   :  { %36 = sfence }
  0x14   :  { %v196_v0 = vld [vmem:[#allocation7 + $0x138] sm:$0xff]  ;;  %v195_v2 = vld [vmem:[#allocation7 + $0x130] sm:$0xff]  ;;  %v1026_v6 = vmov 0.0   ;;  %v194_v7 = vld [vmem:[#allocation7 + $0x128] sm:$0xff]  ;;  %s1060_s0 = sld [smem:[#allocation3 + $0x1]]  ;;  %vm1027_vm0 = vmmov 0  }
  0x15   :  { %v180_v1 = vld [vmem:[#allocation7 + $0xb8] sm:$0xff]  ;;  %728 = vmatprep.subr.mxu0 %v196_v0  ;;  %v179_v4 = vld [vmem:[#allocation7 + $0xb0] sm:$0xff]  ;;  %38 = vst [vmem:[#allocation2 + $0x8] sm:$0xff] %v1026_v6  ;;  %37 = vst [vmem:[#allocation2] sm:$0xff] %v1026_v6  ;;  %s1062_s1 = sld [smem:[#allocation3 + $0x2]]  ;;  %vm484_vm1 = vcmask 1040384  }
  0x16   :  { %v228_v3 = vld [vmem:[#allocation7 + $0x238] sm:$0xff]  ;;  %39 = vst [vmem:[#allocation2 + $0x10] sm:$0xff] %v1026_v6  ;;  %40 = vst [vmem:[#allocation2 + $0x18] sm:$0xff] %v1026_v6  ;;  %729 = vmatpush3.msra.mxu0 %v180_v1  ;;  %v227_v8 = vld [vmem:[#allocation7 + $0x230] sm:$0xff]  ;;  %s1064_s19 = sld [smem:[#allocation3 + $0x3]]  ;;  %vm676_vm2 = vcmask 33792  }
  0x17   :  { %v212_v5 = vld [vmem:[#allocation7 + $0x1b8] sm:$0xff]  ;;  %41 = vst [vmem:[#allocation2 + $0x20] sm:$0xff] %v1026_v6  ;;  %42 = vst [vmem:[#allocation2 + $0x28] sm:$0xff] %v1026_v6  ;;  %766 = vmatprep.subr.mxu1 %v228_v3  ;;  %730 = vmatprep.subr.mxu0 %v195_v2  ;;  %v178_v9 = vld [vmem:[#allocation7 + $0xa8] sm:$0xff]  ;;  %s1066_s20 = sld [smem:[#allocation3 + $0x4]] }
  0x18   :  { %43 = vst [vmem:[#allocation2 + $0x30] sm:$0xff] %v1026_v6  ;;  %44 = vst [vmem:[#allocation2 + $0x38] sm:$0xff] %v1026_v6  ;;  %767 = vmatpush3.msra.mxu1 %v212_v5  ;;  %v211_v10 = vld [vmem:[#allocation7 + $0x1b0] sm:$0xff]  ;;  %v226_v11 = vld [vmem:[#allocation7 + $0x228] sm:$0xff]  ;;  %731 = vmatpush3.msra.mxu0 %v179_v4  ;;  %s1068_s21 = sld [smem:[#allocation3 + $0x5]] }
  0x19   :  { %45 = vst [vmem:[#allocation2 + $0x40] sm:$0xff] %v1026_v6  ;;  %46 = vst [vmem:[#allocation2 + $0x48] sm:$0xff] %v1026_v6  ;;  %768 = vmatprep.subr.mxu1 %v227_v8  ;;  %v193_v12 = vld [vmem:[#allocation7 + $0x120] sm:$0xff]  ;;  %v210_v13 = vld [vmem:[#allocation7 + $0x1a8] sm:$0xff]  ;;  %732 = vmatprep.subr.mxu0 %v194_v7  ;;  %s1070_s22 = sld [smem:[#allocation3 + $0x6]] }
  0x1a   :  { %769 = vmatpush3.msra.mxu1 %v211_v10  ;;  %v177_v14 = vld [vmem:[#allocation7 + $0xa0] sm:$0xff]  ;;  %733 = vmatpush3.msra.mxu0 %v178_v9  ;;  %v192_v16 = vld [vmem:[#allocation7 + $0x118] sm:$0xff]  ;;  %v191_v20 = vld [vmem:[#allocation7 + $0x110] sm:$0xff]  ;;  %s1072_s23 = sld [smem:[#allocation3]]  ;;  %s51_s5 = scalar_lea.vmem [#allocation7], %s1060_s0 }
  0x1b   :  { %v225_v15 = vld [vmem:[#allocation7 + $0x220] sm:$0xff]  ;;  %770 = vmatprep.subr.mxu1 %v226_v11  ;;  %734 = vmatprep.subr.mxu0 %v193_v12  ;;  %v176_v18 = vld [vmem:[#allocation7 + $0x98] sm:$0xff]  ;;  %v175_v22 = vld [vmem:[#allocation7 + $0x90] sm:$0xff]  ;;  %s1074_s24 = sld [smem:[#allocation3 + $0x7]]  ;;  %s54_s6 = scalar_lea.vmem [#allocation7], %s1062_s1 }
  0x1c   :  { %v209_v17 = vld [vmem:[#allocation7 + $0x1a0] sm:$0xff]  ;;  %771 = vmatpush3.msra.mxu1 %v210_v13  ;;  %v224_v19 = vld [vmem:[#allocation7 + $0x218] sm:$0xff]  ;;  %735 = vmatpush3.msra.mxu0 %v177_v14  ;;  %v223_v23 = vld [vmem:[#allocation7 + $0x210] sm:$0xff]  ;;  %s1076_s25 = sld [smem:[#allocation3 + $0x81]]  ;;  %s57_s7 = scalar_lea.vmem [#allocation7], %s1064_s19 }
  0x1d   :  { %772 = vmatprep.subr.mxu1 %v225_v15  ;;  %v208_v21 = vld [vmem:[#allocation7 + $0x198] sm:$0xff]  ;;  %736 = vmatprep.subr.mxu0 %v192_v16  ;;  %v190_v24 = vld [vmem:[#allocation7 + $0x108] sm:$0xff]  ;;  %v207_v25 = vld [vmem:[#allocation7 + $0x190] sm:$0xff]  ;;  %s1078_s26 = sld [smem:[#allocation3 + $0x82]]  ;;  %s60_s8 = scalar_lea.vmem [#allocation7], %s1066_s20 }
  0x1e   :  { %773 = vmatpush3.msra.mxu1 %v209_v17  ;;  %737 = vmatpush3.msra.mxu0 %v176_v18  ;;  %v174_v26 = vld [vmem:[#allocation7 + $0x88] sm:$0xff]  ;;  %v189_v28 = vld [vmem:[#allocation7 + $0x100] sm:$0xff]  ;;  %v188_v32 = vld [vmem:[#allocation7 + $0xf8] sm:$0xff]  ;;  %s1080_s27 = sld [smem:[#allocation3 + $0x83]]  ;;  %s63_s9 = scalar_lea.vmem [#allocation7], %s1068_s21 }
  0x1f   :  { %774 = vmatprep.subr.mxu1 %v224_v19  ;;  %738 = vmatprep.subr.mxu0 %v191_v20  ;;  %v222_v27 = vld [vmem:[#allocation7 + $0x208] sm:$0xff]  ;;  %v173_v30 = vld [vmem:[#allocation7 + $0x80] sm:$0xff]  ;;  %v172_v34 = vld [vmem:[#allocation7 + $0x78] sm:$0xff]  ;;  %s1082_s28 = sld [smem:[#allocation3 + $0x84]]  ;;  %s66_s10 = scalar_lea.vmem [#allocation7], %s1070_s22 }
  0x20   :  { %775 = vmatpush3.msra.mxu1 %v208_v21  ;;  %739 = vmatpush3.msra.mxu0 %v175_v22  ;;  %v206_v29 = vld [vmem:[#allocation7 + $0x188] sm:$0xff]  ;;  %v221_v31 = vld [vmem:[#allocation7 + $0x200] sm:$0xff]  ;;  %v220_v35 = vld [vmem:[#allocation7 + $0x1f8] sm:$0xff]  ;;  %s1084_s29 = sld [smem:[#allocation3 + $0x85]]  ;;  %s48_s11 = scalar_lea.vmem [#allocation7], %s1072_s23 }
  0x21   :  { %776 = vmatprep.subr.mxu1 %v223_v23  ;;  %740 = vmatprep.subr.mxu0 %v190_v24  ;;  %v205_v33 = vld [vmem:[#allocation7 + $0x180] sm:$0xff]  ;;  %v187_v36 = vld [vmem:[#allocation7 + $0xf0] sm:$0xff]  ;;  %v204_v37 = vld [vmem:[#allocation7 + $0x178] sm:$0xff]  ;;  %s1086_s30 = sld [smem:[#allocation3 + $0x86]]  ;;  %s69_s12 = scalar_lea.vmem [#allocation7], %s1074_s24 }
  0x22   :  { %777 = vmatpush3.msra.mxu1 %v207_v25  ;;  %741 = vmatpush3.msra.mxu0 %v174_v26  ;;  %v171_v38 = vld [vmem:[#allocation7 + $0x70] sm:$0xff]  ;;  %v186_v39 = vld [vmem:[#allocation7 + $0xe8] sm:$0xff]  ;;  %v185_v43 = vld [vmem:[#allocation7 + $0xe0] sm:$0xff]  ;;  %s1088_s3 = sld [smem:[#allocation3 + $0x80]]  ;;  %s105_s13 = scalar_lea.vmem [#allocation7], %s1076_s25 }
  0x23   :  { %778 = vmatprep.subr.mxu1 %v222_v27  ;;  %742 = vmatprep.subr.mxu0 %v189_v28  ;;  %v219_v40 = vld [vmem:[#allocation7 + $0x1f0] sm:$0xff]  ;;  %v170_v41 = vld [vmem:[#allocation7 + $0x68] sm:$0xff]  ;;  %v169_v45 = vld [vmem:[#allocation7 + $0x60] sm:$0xff]  ;;  %s1090_s4 = sld [smem:[#allocation3 + $0x87]]  ;;  %s108_s14 = scalar_lea.vmem [#allocation7], %s1078_s26 }
  0x24   :  { %779 = vmatpush3.msra.mxu1 %v206_v29  ;;  %743 = vmatpush3.msra.mxu0 %v173_v30  ;;  %v203_v42 = vld [vmem:[#allocation7 + $0x170] sm:$0xff]  ;;  %v218_v44 = vld [vmem:[#allocation7 + $0x1e8] sm:$0xff]  ;;  %v184_v47 = vld [vmem:[#allocation7 + $0xd8] sm:$0xff]  ;;  %s111_s15 = scalar_lea.vmem [#allocation7], %s1080_s27  ;;  %s1028_s19 = smov [#allocation8]  }
  0x25   :  { %780 = vmatprep.subr.mxu1 %v221_v31  ;;  %744 = vmatprep.subr.mxu0 %v188_v32  ;;  %v202_v46 = vld [vmem:[#allocation7 + $0x168] sm:$0xff]  ;;  %v217_v48 = vld [vmem:[#allocation7 + $0x1e0] sm:$0xff]  ;;  %v52_v49 = vld [vmem:[%s51_s5] sm:$0x1]  ;;  %s114_s16 = scalar_lea.vmem [#allocation7], %s1082_s28  ;;  %s684_s20 = sshll.u32 %s1028_s19, 4  ;;  %s685_s20 = int_to_ptr.vmem [resolvable:$true] %s684_s20 }
  0x26   :  { %781 = vmatpush3.msra.mxu1 %v205_v33  ;;  %745 = vmatpush3.msra.mxu0 %v172_v34  ;;  %v55_v50 = vld [vmem:[%s54_s6] sm:$0x1]  ;;  %72 = vst [vmem:[#allocation2 + $0x8] sm:$0x1] %v52_v49  ;;  %76 = vst [vmem:[#allocation2 + $0x1] sm:$0x1] %v52_v49  ;;  %p1001_p6 = scmp.lt.s32.totalorder %s685_s20, %s685_s20 }
  0x27   :  { %782 = vmatprep.subr.mxu1 %v220_v35  ;;  %746 = vmatprep.subr.mxu0 %v187_v36  ;;  %v58_v51 = vld [vmem:[%s57_s7] sm:$0x1]  ;;  %77 = vst [vmem:[#allocation2 + $0x9] sm:$0x1] %v55_v50  ;;  %73 = vst [vmem:[#allocation2 + $0x10] sm:$0x1] %v55_v50 }
  0x28   :  { %783 = vmatpush3.msra.mxu1 %v204_v37  ;;  %747 = vmatpush3.msra.mxu0 %v171_v38  ;;  %v61_v52 = vld [vmem:[%s60_s8] sm:$0x1]  ;;  %81 = vst [vmem:[#allocation2 + $0x2] sm:$0x1] %v55_v50  ;;  %v201_v54 = vld [vmem:[#allocation7 + $0x160] sm:$0xff]  ;;  %v168_v57 = vld [vmem:[#allocation7 + $0x58] sm:$0xff] }
  0x29   :  { %784 = vmatprep.subr.mxu1 %v219_v40  ;;  %748 = vmatprep.subr.mxu0 %v186_v39  ;;  %v64_v53 = vld [vmem:[%s63_s9] sm:$0x1]  ;;  %82 = vst [vmem:[#allocation2 + $0xa] sm:$0x1] %v58_v51  ;;  %87 = vst [vmem:[#allocation2 + $0xb] sm:$0x1] %v61_v52 }
  0x2a   :  { %785 = vmatpush3.msra.mxu1 %v203_v42  ;;  %749 = vmatpush3.msra.mxu0 %v170_v41  ;;  %v67_v55 = vld [vmem:[%s66_s10] sm:$0x1]  ;;  %92 = vst [vmem:[#allocation2 + $0xc] sm:$0x1] %v64_v53  ;;  %74 = vst [vmem:[#allocation2 + $0x18] sm:$0x1] %v58_v51 }
  0x2b   :  { %786 = vmatprep.subr.mxu1 %v218_v44  ;;  %75 = vst [vmem:[#allocation2 + $0x20] sm:$0x1] %v61_v52  ;;  %78 = vst [vmem:[#allocation2 + $0x11] sm:$0x1] %v58_v51  ;;  %v49_v56 = vld [vmem:[%s48_s11] sm:$0x1]  ;;  %750 = vmatprep.subr.mxu0 %v185_v43 }
  0x2c   :  { %79 = vst [vmem:[#allocation2 + $0x19] sm:$0x1] %v61_v52  ;;  %80 = vst [vmem:[#allocation2 + $0x21] sm:$0x1] %v64_v53  ;;  %787 = vmatpush3.msra.mxu1 %v202_v46  ;;  %v216_v58 = vld [vmem:[#allocation7 + $0x1d8] sm:$0xff]  ;;  %751 = vmatpush3.msra.mxu0 %v169_v45  ;;  %v183_v59 = vld [vmem:[#allocation7 + $0xd0] sm:$0xff] }
  0x2d   :  { %83 = vst [vmem:[#allocation2 + $0x12] sm:$0x1] %v61_v52  ;;  %84 = vst [vmem:[#allocation2 + $0x1a] sm:$0x1] %v64_v53  ;;  %788 = vmatprep.subr.mxu1 %v217_v48  ;;  %v200_v60 = vld [vmem:[#allocation7 + $0x158] sm:$0xff]  ;;  %752 = vmatprep.subr.mxu0 %v184_v47  ;;  %v167_v62 = vld [vmem:[#allocation7 + $0x50] sm:$0xff] }
  0x2e   :  { %86 = vst [vmem:[#allocation2 + $0x3] sm:$0x1] %v58_v51  ;;  %88 = vst [vmem:[#allocation2 + $0x13] sm:$0x1] %v64_v53  ;;  %v70_v61 = vld [vmem:[%s69_s12] sm:$0x1]  ;;  %789 = vmatpush3.msra.mxu1 %v201_v54  ;;  %753 = vmatpush3.msra.mxu0 %v168_v57 }
  0x2f   :  { %91 = vst [vmem:[#allocation2 + $0x4] sm:$0x1] %v61_v52  ;;  %96 = vst [vmem:[#allocation2 + $0x5] sm:$0x1] %v64_v53  ;;  %v182_v63 = vld [vmem:[#allocation7 + $0xc8] sm:$0xff]  ;;  %v215_v0 = vld [vmem:[#allocation7 + $0x1d0] sm:$0xff]  ;;  %790 = vmatprep.subr.mxu1 %v216_v58  ;;  %754 = vmatprep.subr.mxu0 %v183_v59 }
  0x30   :  { %97 = vst [vmem:[#allocation2 + $0xd] sm:$0x1] %v67_v55  ;;  %85 = vst [vmem:[#allocation2 + $0x22] sm:$0x1] %v67_v55  ;;  %v166_v1 = vld [vmem:[#allocation7 + $0x48] sm:$0xff]  ;;  %v199_v2 = vld [vmem:[#allocation7 + $0x150] sm:$0xff]  ;;  %791 = vmatpush3.msra.mxu1 %v200_v60  ;;  %755 = vmatpush3.msra.mxu0 %v167_v62 }
  0x31   :  { %89 = vst [vmem:[#allocation2 + $0x1b] sm:$0x1] %v67_v55  ;;  %93 = vst [vmem:[#allocation2 + $0x14] sm:$0x1] %v67_v55  ;;  %v181_v3 = vld [vmem:[#allocation7 + $0xc0] sm:$0xff]  ;;  %v214_v4 = vld [vmem:[#allocation7 + $0x1c8] sm:$0xff]  ;;  %792 = vmatprep.subr.mxu1 %v215_v0  ;;  %756 = vmatprep.subr.mxu0 %v182_v63 }
  0x32   :  { %71 = vst [vmem:[#allocation2] sm:$0x1] %v49_v56  ;;  %94 = vst [vmem:[#allocation2 + $0x1c] sm:$0x1] %v70_v61  ;;  %v165_v5 = vld [vmem:[#allocation7 + $0x40] sm:$0xff]  ;;  %v198_v7 = vld [vmem:[#allocation7 + $0x148] sm:$0xff]  ;;  %793 = vmatpush3.msra.mxu1 %v199_v2  ;;  %757 = vmatpush3.msra.mxu0 %v166_v1 }
  0x33   :  { %99 = vst [vmem:[#allocation2 + $0x1d] sm:$0x1] %v70_v61  ;;  %90 = vst [vmem:[#allocation2 + $0x23] sm:$0x1] %v70_v61  ;;  %v213_v8 = vld [vmem:[#allocation7 + $0x1c0] sm:$0xff]  ;;  %s117_s17 = scalar_lea.vmem [#allocation7], %s1084_s29  ;;  %794 = vmatprep.subr.mxu1 %v214_v4  ;;  %758 = vmatprep.subr.mxu0 %v181_v3 }
  0x34   :  { %95 = vst [vmem:[#allocation2 + $0x24] sm:$0x1] %v70_v61  ;;  %98 = vst [vmem:[#allocation2 + $0x15] sm:$0x1] %v70_v61  ;;  %v106_v9 = vld [vmem:[%s105_s13] sm:$0x1]  ;;  %759 = vmatpush3.msra.mxu0 %v165_v5  ;;  %795 = vmatpush3.msra.mxu1 %v198_v7 }
  0x35   :  { %100 = vst [vmem:[#allocation2 + $0x25] sm:$0x1] %v70_v61  ;;  %v109_v10 = vld [vmem:[%s108_s14] sm:$0x1]  ;;  %s120_s18 = scalar_lea.vmem [#allocation7], %s1086_s30  ;;  %s102_s0 = scalar_lea.vmem [#allocation7], %s1088_s3  ;;  %796 = vmatprep.subr.mxu1 %v213_v8 }
  0x36   :  { %v112_v11 = vld [vmem:[%s111_s15] sm:$0x1]  ;;  %126 = vst [vmem:[#allocation2 + $0x30] sm:$0x1] %v106_v9  ;;  %131 = vst [vmem:[#allocation2 + $0x31] sm:$0x1] %v109_v10 }
  0x37   :  { %v115_v12 = vld [vmem:[%s114_s16] sm:$0x1]  ;;  %136 = vst [vmem:[#allocation2 + $0x32] sm:$0x1] %v112_v11  ;;  %127 = vst [vmem:[#allocation2 + $0x38] sm:$0x1] %v109_v10 }
  0x38   :  { %v118_v13 = vld [vmem:[%s117_s17] sm:$0x1]  ;;  %128 = vst [vmem:[#allocation2 + $0x40] sm:$0x1] %v112_v11  ;;  %130 = vst [vmem:[#allocation2 + $0x29] sm:$0x1] %v106_v9 }
  0x39   :  { %v121_v14 = vld [vmem:[%s120_s18] sm:$0x1]  ;;  %132 = vst [vmem:[#allocation2 + $0x39] sm:$0x1] %v112_v11  ;;  %135 = vst [vmem:[#allocation2 + $0x2a] sm:$0x1] %v109_v10 }
  0x3a   :  { %140 = vst [vmem:[#allocation2 + $0x2b] sm:$0x1] %v112_v11  ;;  %v156_v15 = vld [vmem:[#allocation2 + $0x8] sm:$0xff]  ;;  %v155_v16 = vld [vmem:[#allocation2] sm:$0xff]  ;;  %141 = vst [vmem:[#allocation2 + $0x33] sm:$0x1] %v115_v12 }
  0x3b   :  { %146 = vst [vmem:[#allocation2 + $0x34] sm:$0x1] %v118_v13  ;;  %151 = vst [vmem:[#allocation2 + $0x35] sm:$0x1] %v121_v14  ;;  %v103_v17 = vld [vmem:[%s102_s0] sm:$0x1]  ;;  %311 = vmatprep.mubr.f32.mxu0 %v156_v15 }
  0x3c   :  { %129 = vst [vmem:[#allocation2 + $0x48] sm:$0x1] %v115_v12  ;;  %133 = vst [vmem:[#allocation2 + $0x41] sm:$0x1] %v115_v12  ;;  %v244_v18 = vld [vmem:[#allocation7 + $0x2b8] sm:$0xff]  ;;  %v197_v19 = vld [vmem:[#allocation7 + $0x140] sm:$0xff]  ;;  %312 = vmatmul.mubr.f32.vlgmr.msra.gmra.mxu0 %v155_v16 }
  0x3d   :  { %134 = vst [vmem:[#allocation2 + $0x49] sm:$0x1] %v118_v13  ;;  %137 = vst [vmem:[#allocation2 + $0x3a] sm:$0x1] %v115_v12  ;;  %s123_s1 = scalar_lea.vmem [#allocation7], %s1090_s4  ;;  %v158_v21 = vld [vmem:[#allocation2 + $0x18] sm:$0xff]  ;;  %856 = vmatprep.subr.mxu0 %v244_v18  ;;  %797 = vmatpush3.msra.mxu1 %v197_v19 }
  0x3e   :  { %138 = vst [vmem:[#allocation2 + $0x42] sm:$0x1] %v118_v13  ;;  %139 = vst [vmem:[#allocation2 + $0x4a] sm:$0x1] %v121_v14  ;;  %v124_v20 = vld [vmem:[%s123_s1] sm:$0x1]  ;;  %386 = vmatprep.mubr.f32.mxu1 %v158_v21  ;;  %857 = vmatpush3.msra.mxu0 %v244_v18 }
  0x3f   :  { %142 = vst [vmem:[#allocation2 + $0x3b] sm:$0x1] %v118_v13  ;;  %143 = vst [vmem:[#allocation2 + $0x43] sm:$0x1] %v121_v14  ;;  %v157_v22 = vld [vmem:[#allocation2 + $0x10] sm:$0xff]  ;;  %v243_v23 = vld [vmem:[#allocation7 + $0x2b0] sm:$0xff]  ;;  %891 = vmatprep.subr.mxu1 %v1026_v6 }
  0x40   :  { %145 = vst [vmem:[#allocation2 + $0x2c] sm:$0x1] %v115_v12  ;;  %147 = vst [vmem:[#allocation2 + $0x3c] sm:$0x1] %v121_v14  ;;  %v242_v24 = vld [vmem:[#allocation7 + $0x2a8] sm:$0xff]  ;;  %387 = vmatmul.mubr.f32.vlgmr.msra.gmra.mxu1 %v157_v22  ;;  %858 = vmatprep.subr.mxu0 %v243_v23  ;;  %v241_v25 = vld [vmem:[#allocation7 + $0x2a0] sm:$0xff] }
  0x41   :  { %150 = vst [vmem:[#allocation2 + $0x2d] sm:$0x1] %v118_v13  ;;  %125 = vst [vmem:[#allocation2 + $0x28] sm:$0x1] %v103_v17  ;;  %859 = vmatpush3.msra.mxu0 %v243_v23  ;;  %v240_v28 = vld [vmem:[#allocation7 + $0x298] sm:$0xff]  ;;  %v159_v31 = vld [vmem:[#allocation2 + $0x20] sm:$0xff] }
  0x42   :  { %148 = vst [vmem:[#allocation2 + $0x44] sm:$0x1] %v124_v20  ;;  %153 = vst [vmem:[#allocation2 + $0x45] sm:$0x1] %v124_v20  ;;  %v161_v26 = vld [vmem:[#allocation2 + $0x30] sm:$0xff]  ;;  %860 = vmatprep.subr.mxu0 %v242_v24  ;;  %v239_v32 = vld [vmem:[#allocation7 + $0x290] sm:$0xff] }
  0x43   :  { %144 = vst [vmem:[#allocation2 + $0x4b] sm:$0x1] %v124_v20  ;;  %149 = vst [vmem:[#allocation2 + $0x4c] sm:$0x1] %v124_v20  ;;  %316 = vmatprep.mubr.f32.mxu0 %v161_v26  ;;  %861 = vmatpush3.msra.mxu0 %v242_v24  ;;  %v238_v33 = vld [vmem:[#allocation7 + $0x288] sm:$0xff]  ;;  %v237_v34 = vld [vmem:[#allocation7 + $0x280] sm:$0xff] }
  0x44   :  { %152 = vst [vmem:[#allocation2 + $0x3d] sm:$0x1] %v124_v20  ;;  %154 = vst [vmem:[#allocation2 + $0x4d] sm:$0x1] %v124_v20  ;;  %862 = vmatprep.subr.mxu0 %v241_v25  ;;  %v236_v35 = vld [vmem:[#allocation7 + $0x278] sm:$0xff]  ;;  %v235_v36 = vld [vmem:[#allocation7 + $0x270] sm:$0xff] }
  0x45   :  { %863 = vmatpush3.msra.mxu0 %v241_v25  ;;  %v234_v37 = vld [vmem:[#allocation7 + $0x268] sm:$0xff]  ;;  %v233_v38 = vld [vmem:[#allocation7 + $0x260] sm:$0xff]  ;;  %v232_v39 = vld [vmem:[#allocation7 + $0x258] sm:$0xff]  ;;  %s996_s21 = scalar_lea.vmem %s685_s20, 32 }
  0x46   :  { %864 = vmatprep.subr.mxu0 %v240_v28  ;;  %v231_v40 = vld [vmem:[#allocation7 + $0x250] sm:$0xff]  ;;  %v230_v41 = vld [vmem:[#allocation7 + $0x248] sm:$0xff]  ;;  %v229_v42 = vld [vmem:[#allocation7 + $0x240] sm:$0xff]  ;;  %p997_p5 = scmp.ne.s32.totalorder %s685_s20, %s996_s21  ;;  %p1002_p7 = scmp.lt.s32.totalorder %s996_s21, %s996_s21 }
  0x47   :  { %865 = vmatpush3.msra.mxu0 %v240_v28  ;;  %v508_v44 = vld [vmem:[#allocation7 + $0x350] sm:$0xff]  ;;  %v507_v45 = vld [vmem:[#allocation7 + $0x348] sm:$0xff]  ;;  %v506_v46 = vld [vmem:[#allocation7 + $0x340] sm:$0xff] }
  0x48   :  { %v160_v27 = vld [vmem:[#allocation2 + $0x28] sm:$0xff]  ;;  %866 = vmatprep.subr.mxu0 %v239_v32  ;;  %892 = vmatpush3.msra.mxu1 %v508_v44  ;;  %v504_v48 = vld [vmem:[#allocation7 + $0x330] sm:$0xff]  ;;  %v503_v49 = vld [vmem:[#allocation7 + $0x328] sm:$0xff]  ;;  %p1003_p8 = por %p1002_p7, %p1001_p6 }
  0x49   :  { %v163_v29 = vld [vmem:[#allocation2 + $0x40] sm:$0xff]  ;;  %317 = vmatmul.mubr.f32.gmra.mxu0 %v160_v27  ;;  %893 = vmatprep.subr.mxu1 %v1026_v6  ;;  %v505_v47 = vld [vmem:[#allocation7 + $0x338] sm:$0xff]  ;;  %v502_v50 = vld [vmem:[#allocation7 + $0x320] sm:$0xff] }
  0x4a   :  { %391 = vmatprep.mubr.f32.mxu1 %v163_v29  ;;  %888 = vmatprep.mubr.f32.mxu0 %v159_v31  ;;  %v501_v51 = vld [vmem:[#allocation7 + $0x318] sm:$0xff]  ;;  %v500_v52 = vld [vmem:[#allocation7 + $0x310] sm:$0xff]  ;;  %v499_v53 = vld [vmem:[#allocation7 + $0x308] sm:$0xff]  ;;  %p1004_p9 = pnand %p1003_p8, %p997_p5 }
  0x4b   :  { %v162_v30 = vld [vmem:[#allocation2 + $0x38] sm:$0xff]  ;;  %867 = vmatpush3.msra.mxu0 %v239_v32  ;;  %v164_v43 = vld [vmem:[#allocation2 + $0x48] sm:$0xff]  ;;  %894 = vmatpush3.msra.mxu1 %v507_v45  ;;  %v498_v54 = vld [vmem:[#allocation7 + $0x300] sm:$0xff] }
  0x4c   :  { %392 = vmatmul.mubr.f32.gmra.mxu1 %v162_v30  ;;  %868 = vmatprep.subr.mxu0 %v238_v33  ;;  %v497_v55 = vld [vmem:[#allocation7 + $0x2f8] sm:$0xff]  ;;  %v496_v56 = vld [vmem:[#allocation7 + $0x2f0] sm:$0xff]  ;;  %v495_v57 = vld [vmem:[#allocation7 + $0x2e8] sm:$0xff] }
  0x4d   :  { %869 = vmatpush3.msra.mxu0 %v238_v33  ;;  %895 = vmatprep.subr.mxu1 %v1026_v6  ;;  %v494_v58 = vld [vmem:[#allocation7 + $0x2e0] sm:$0xff]  ;;  %v493_v59 = vld [vmem:[#allocation7 + $0x2d8] sm:$0xff]  ;;  %v599_v61 = vld [vmem:[#allocation7 + $0x3d0] sm:$0xff] }
  0x4e   :  { %870 = vmatprep.subr.mxu0 %v237_v34  ;;  %896 = vmatpush3.msra.mxu1 %v506_v46  ;;  %v600_v60 = vld [vmem:[#allocation7 + $0x3d8] sm:$0xff]  ;;  %v598_v62 = vld [vmem:[#allocation7 + $0x3c8] sm:$0xff]  ;;  %v597_v63 = vld [vmem:[#allocation7 + $0x3c0] sm:$0xff] }
  0x4f   :  { %871 = vmatpush3.msra.mxu0 %v237_v34  ;;  %897 = vmatprep.subr.mxu1 %v1026_v6  ;;  %v596_v0 = vld [vmem:[#allocation7 + $0x3b8] sm:$0xff]  ;;  %v595_v1 = vld [vmem:[#allocation7 + $0x3b0] sm:$0xff]  ;;  %v594_v2 = vld [vmem:[#allocation7 + $0x3a8] sm:$0xff] }
  0x50   :  { %872 = vmatprep.subr.mxu0 %v236_v35  ;;  %898 = vmatpush3.msra.mxu1 %v505_v47  ;;  %v593_v3 = vld [vmem:[#allocation7 + $0x3a0] sm:$0xff]  ;;  %v592_v4 = vld [vmem:[#allocation7 + $0x398] sm:$0xff]  ;;  %v591_v5 = vld [vmem:[#allocation7 + $0x390] sm:$0xff] }
  0x51   :  { %873 = vmatpush3.msra.mxu0 %v236_v35  ;;  %899 = vmatprep.subr.mxu1 %v1026_v6  ;;  %v590_v7 = vld [vmem:[#allocation7 + $0x388] sm:$0xff]  ;;  %v589_v8 = vld [vmem:[#allocation7 + $0x380] sm:$0xff]  ;;  %v588_v9 = vld [vmem:[#allocation7 + $0x378] sm:$0xff] }
  0x52   :  { %874 = vmatprep.subr.mxu0 %v235_v36  ;;  %900 = vmatpush3.msra.mxu1 %v504_v48  ;;  %v246_v18 = vld [vmem:[#allocation7 + $0x2c8] sm:$0xff]  ;;  %v245_v23 = vld [vmem:[#allocation7 + $0x2c0] sm:$0xff]  ;;  %v725_v44 = vld [vmem:[#allocation7 + $0x2d0] ss:$0 sm:$0xff] }
  0x53   :  { %875 = vmatpush3.msra.mxu0 %v235_v36  ;;  %901 = vmatprep.subr.mxu1 %v1026_v6  ;;  %v587_v48 = vld [vmem:[#allocation7 + $0x370] sm:$0xff] }
  0x54   :  { %876 = vmatprep.subr.mxu0 %v234_v37  ;;  %902 = vmatpush3.msra.mxu1 %v503_v49  ;;  %v586_v49 = vld [vmem:[#allocation7 + $0x368] sm:$0xff] }
  0x55   :  { %877 = vmatpush3.msra.mxu0 %v234_v37  ;;  %903 = vmatprep.subr.mxu1 %v1026_v6 }
  0x56   :  { %878 = vmatprep.subr.mxu0 %v233_v38  ;;  %904 = vmatpush3.msra.mxu1 %v502_v50  ;;  %v585_v50 = vld [vmem:[#allocation7 + $0x360] sm:$0xff] }
  0x57   :  { %879 = vmatpush3.msra.mxu0 %v233_v38  ;;  %905 = vmatprep.subr.mxu1 %v1026_v6 }
  0x58   :  { %880 = vmatprep.subr.mxu0 %v232_v39  ;;  %906 = vmatpush3.msra.mxu1 %v501_v51  ;;  %v726_v51 = vld [vmem:[#allocation7 + $0x358] ss:$0 sm:$0xff] }
  0x59   :  { %881 = vmatpush3.msra.mxu0 %v232_v39  ;;  %907 = vmatprep.subr.mxu1 %v1026_v6 }
  0x5a   :  { %882 = vmatprep.subr.mxu0 %v231_v40  ;;  %908 = vmatpush3.msra.mxu1 %v500_v52 }
  0x5b   :  { %883 = vmatpush3.msra.mxu0 %v231_v40  ;;  %909 = vmatprep.subr.mxu1 %v1026_v6 }
  0x5c   :  { %884 = vmatprep.subr.mxu0 %v230_v41  ;;  %910 = vmatpush3.msra.mxu1 %v499_v53 }
  0x5d   :  { %885 = vmatpush3.msra.mxu0 %v230_v41  ;;  %911 = vmatprep.subr.mxu1 %v1026_v6 }
  0x5e   :  { %886 = vmatprep.subr.mxu0 %v229_v42  ;;  %912 = vmatpush3.msra.mxu1 %v498_v54 }
  0x5f   :  { %887 = vmatpush3.msra.mxu0 %v229_v42  ;;  %913 = vmatprep.subr.mxu1 %v1026_v6 }
  0x60   :  { %889 = vmatmul.mubr.f32.vlgmr.msra.gmra.mxu0 %v164_v43  ;;  %926 = vmatprep.subr.mxu0 %v1026_v6 }
  0x61   :  { %914 = vmatpush3.msra.mxu1 %v497_v55  ;;  %923 = vmatprep.mubr.msk.f32.mxu1 %vm1027_vm0, %v1026_v6 }
  0x62   :  { %915 = vmatprep.subr.mxu1 %v1026_v6  ;;  %958 = vmatprep.mubr.msk.f32.mxu0 %vm1027_vm0, %v1026_v6 }
  0x63   :  { %916 = vmatpush3.msra.mxu1 %v496_v56  ;;  %927 = vmatpush3.msra.mxu0 %v600_v60  ;;  %v727_v56 = vld [vmem:[#allocation7 + $0x3e0] ss:$0 sm:$0xff] }
  0x64   :  { %917 = vmatprep.subr.mxu1 %v1026_v6  ;;  %928 = vmatprep.subr.mxu0 %v1026_v6 }
  0x65   :  { %918 = vmatpush3.msra.mxu1 %v495_v57  ;;  %929 = vmatpush3.msra.mxu0 %v599_v61 }
  0x66   :  { %919 = vmatprep.subr.mxu1 %v1026_v6  ;;  %930 = vmatprep.subr.mxu0 %v1026_v6 }
  0x67   :  { %920 = vmatpush3.msra.mxu1 %v494_v58  ;;  %931 = vmatpush3.msra.mxu0 %v598_v62 }
  0x68   :  { %921 = vmatprep.subr.mxu1 %v1026_v6  ;;  %932 = vmatprep.subr.mxu0 %v1026_v6 }
  0x69   :  { %922 = vmatpush3.msra.mxu1 %v493_v59  ;;  %933 = vmatpush3.msra.mxu0 %v597_v63 }
  0x6a   :  { %934 = vmatprep.subr.mxu0 %v1026_v6 }
  0x6b   :  { %935 = vmatpush3.msra.mxu0 %v596_v0 }
  0x6c   :  { %936 = vmatprep.subr.mxu0 %v1026_v6 }
  0x6d   :  { %937 = vmatpush3.msra.mxu0 %v595_v1 }
  0x6e   :  { %938 = vmatprep.subr.mxu0 %v1026_v6 }
  0x6f   :  { %939 = vmatpush3.msra.mxu0 %v594_v2 }
  0x70   :  { %940 = vmatprep.subr.mxu0 %v1026_v6 }
  0x71   :  { %941 = vmatpush3.msra.mxu0 %v593_v3 }
  0x72   :  { %942 = vmatprep.subr.mxu0 %v1026_v6 }
  0x73   :  { %943 = vmatpush3.msra.mxu0 %v592_v4 }
  0x74   :  { %944 = vmatprep.subr.mxu0 %v1026_v6 }
  0x75   :  { %945 = vmatpush3.msra.mxu0 %v591_v5 }
  0x76   :  { %946 = vmatprep.subr.mxu0 %v1026_v6 }
  0x77   :  { %947 = vmatpush3.msra.mxu0 %v590_v7 }
  0x78   :  { %948 = vmatprep.subr.mxu0 %v1026_v6 }
  0x79   :  { %949 = vmatpush3.msra.mxu0 %v589_v8 }
  0x7a   :  { %950 = vmatprep.subr.mxu0 %v1026_v6 }
  0x7b   :  { %951 = vmatpush3.msra.mxu0 %v588_v9 }
  0x7c   :  { %952 = vmatprep.subr.mxu0 %v1026_v6 }
  0x7d   :  { %953 = vmatpush3.msra.mxu0 %v587_v48 }
  0x7e   :  { %954 = vmatprep.subr.mxu0 %v1026_v6 }
  0x7f   :  { %955 = vmatpush3.msra.mxu0 %v586_v49 }
  0x80   :  { %956 = vmatprep.subr.mxu0 %v1026_v6 }
  0x81   :  { %957 = vmatpush3.msra.mxu0 %v585_v50 }
  0xfc   :  { %v760_v10 = vpop.f32.mrf.mxu0 }
  0xfe   :  { %v761_v11 = vpop.f32.mrf.mxu0 }
  0xff   :  { %v762_v20 = vadd.f32 %v761_v11, %v760_v10 }
 0x100   :  { %v798_v12 = vpop.f32.mrf.mxu1 }
 0x101   :  { %v314_v24 = vadd.f32 %v762_v20, %v245_v23 }
 0x102   :  { %v799_v14 = vpop.f32.mrf.mxu1 }
 0x103   :  { %v800_v25 = vadd.f32 %v799_v14, %v798_v12 }
 0x105   :  { %v389_v29 = vadd.f32 %v800_v25, %v314_v24 }
 0x109   :  { %v763_v13 = vpop.f32.mrf.mxu0 }
 0x10b   :  { %v764_v15 = vpop.f32.mrf.mxu0 }
 0x10c   :  { %v801_v16 = vpop.f32.mrf.mxu1  ;;  %v765_v17 = vadd.f32 %v764_v15, %v763_v13 }
 0x10e   :  { %v802_v19 = vpop.f32.mrf.mxu1  ;;  %v319_v21 = vadd.f32 %v765_v17, %v246_v18 }
 0x10f   :  { %v803_v22 = vadd.f32 %v802_v19, %v801_v16 }
 0x111   :  { %v394_v26 = vadd.f32 %v803_v22, %v319_v21 }
 0x120   :  { %v890_v27 = vpop.f32.mrf.mxu0 }
 0x121   :  { %v469_v28 = vadd.f32 %v890_v27, %v394_v26 }
 0x122   :  { %v463_v30 = vpop.f32.mrf.mxu0 }
 0x123   :  { %v478_v31 = vrot.slane %v469_v28, 4  ;;  %v464_v32 = vadd.f32 %v463_v30, %v389_v29 }
 0x125   :  { %v479_v33 = vmax.f32 %v469_v28, %v478_v31  ;;  %v472_v34 = vrot.slane %v464_v32, 4 }
 0x127   :  { %v480_v35 = vrot.slane %v479_v33, 2  ;;  %v473_v36 = vmax.f32 %v464_v32, %v472_v34 }
 0x129   :  { %v481_v37 = vmax.f32 %v479_v33, %v480_v35  ;;  %v474_v38 = vrot.slane %v473_v36, 2 }
 0x12b   :  { %v482_v39 = vrot.slane %v481_v37, 1  ;;  %v475_v40 = vmax.f32 %v473_v36, %v474_v38 }
 0x12d   :  { %v476_v41 = vrot.slane %v475_v40, 1  ;;  %v483_v42 = vmax.f32 %v481_v37, %v482_v39 }
 0x12f   :  { %v477_v43 = vmax.f32 %v475_v40, %v476_v41 }
 0x131   :  { %v485_v45 = vsel %vm484_vm1, %v477_v43, %v483_v42 }
 0x132   :  { %v491_v46 = vadd.f32 %v725_v44, %v485_v45 }
 0x134   :  { %v492_v47 = vmax.f32 %v491_v46, 0.0 }
 0x136   :  { %924 = vmatmul.mubr.f32.vlgmr.msra.gmra.mxu1 %v492_v47 }
 0x1f6   :  { %v580_v52 = vpop.f32.mrf.mxu1 }
 0x1f7   :  { %v581_v53 = vadd.f32 %v726_v51, %v580_v52 }
 0x1f8   :  { %v925_v54 = vpop.f32.mrf.mxu1 }
 0x1f9   :  { %v584_v55 = vmax.f32 %v581_v53, 0.0 }
 0x1fb   :  { %959 = vmatmul.mubr.f32.vlgmr.msra.gmra.mxu0 %v584_v55 }
 0x2bb   :  { %v672_v57 = vpop.f32.mrf.mxu0 }
 0x2bc   :  { %v673_v58 = vadd.f32 %v727_v56, %v672_v57 }
 0x2bd   :  { %v960_v59 = vpop.f32.mrf.mxu0 }
 0x2be   :  { %677 = vst.msk [vmem:[#allocation8] sm:$0x3] %vm676_vm2, %v673_v58 }
 0x2bf   :  { %1007 = shalt.err (!%p1004_p9)
}
 0x2c0   :  { %687 = dma.vmem_to_hbm [thread:$0]  %s685_s20, 32, %s1147_s2, [#allocation5]  }
 0x2c1   :  { %1020 = dma.done.wait [#allocation5], 32  }
 0x2c2   :  { %1021 = vsyncadd [#allocation5], 4294967264 }
 0x2c3   :  { %691 = vsyncpa [#allocation4], 1 }
 0x2c4   :  { %692 = vsyncpa [#allocation5], 1 }
 0x2c5   :  { %693 = vsyncpa [#allocation6], 1 }

</bundles_post_ra>
